<compile_context>
chip_gen: v5e
topology: v5e:2x2
jax: 0.10.0
libtpu: 0.0.40
codegen_flags: <defaults>
</compile_context>

<pallas_src>
import jax
import jax.numpy as jnp
from jax.experimental import pallas as pl
from jax.experimental.pallas import tpu as pltpu


def _round_up(n: int, m: int) -> int:
    return (n + m - 1) // m * m


def _mlp_kernel(x_ref, w1_ref, b1_ref, w2_ref, b2_ref, w3_ref, b3_ref, o_ref):
    """One batch tile of the 3-layer MLP.

    x_ref : (TB, Fp)  bf16        w1_ref: (Fp, 64) bf16    b1_ref: (1, 64) f32
    w2_ref: (64, 32)  bf16        b2_ref: (1, 32)  f32
    w3_ref: (1, 32)   f32 (pre-transposed)             b3_ref: (1, 1) f32 SMEM
    o_ref : (TB, 1)   f32
    """
    # Layer 1: bf16 MXU matmul, f32 accumulation; bias/ReLU epilogue in f32.
    h1 = jnp.dot(x_ref[...], w1_ref[...], preferred_element_type=jnp.float32)
    h1 = jnp.maximum(h1 + b1_ref[...], 0.0)
    # Dropout(0.5) -> identity (eval mode).

    # Layer 2: recast activations to bf16 so the MXU stays on its bf16 fast path.
    h2 = jnp.dot(h1.astype(jnp.bfloat16), w2_ref[...],
                 preferred_element_type=jnp.float32)
    h2 = jnp.maximum(h2 + b2_ref[...], 0.0)
    # Dropout(0.5) -> identity (eval mode).

    # Layer 3 (out_features=1): VPU broadcast-multiply + XLU lane reduction
    # instead of a 1-column MXU matmul. b3 read as an SMEM scalar.
    out = jnp.sum(h2 * w3_ref[...], axis=-1, keepdims=True) + b3_ref[0, 0]
    # NOTE: (TB, 1) store is lane-sparse (masked vst); output bytes are tiny
    # relative to the x stream, so we keep the module's natural (B, 1) layout.
    o_ref[...] = out.astype(o_ref.dtype)


def mushroom_classifier_forward(x, params, *, block_b=2048):
    """x: (B, F) float32. Returns logits of shape (B, 1) float32."""
    w1, b1, w2, b2, w3, b3 = params
    B, F = x.shape

    # ---- wrapper-side layout / dtype prep (fuses under jit) ------------------
    Fp = _round_up(F, 128)                                  # lane-width pad only
    tb = min(_round_up(block_b, 16), _round_up(max(B, 1), 16))
    Bp = _round_up(B, tb)

    x_p = jnp.zeros((Bp, Fp), jnp.bfloat16).at[:B, :F].set(x.astype(jnp.bfloat16))
    w1_p = jnp.zeros((Fp, 64), jnp.bfloat16).at[:F, :].set(w1.astype(jnp.bfloat16))
    w2_p = w2.astype(jnp.bfloat16)
    b1_p = b1.reshape(1, 64).astype(jnp.float32)
    b2_p = b2.reshape(1, 32).astype(jnp.float32)
    w3_row = w3.reshape(1, 32).astype(jnp.float32)          # pre-transposed
    b3_s = b3.reshape(1, 1).astype(jnp.float32)             # SMEM scalar

    grid = (Bp // tb,)
    flops = 2 * Bp * (Fp * 64 + 64 * 32 + 32)
    bytes_accessed = (x_p.size * 2 + w1_p.size * 2 + w2_p.size * 2
                      + (b1_p.size + b2_p.size + w3_row.size + b3_s.size) * 4
                      + Bp * 4)

    out = pl.pallas_call(
        _mlp_kernel,
        out_shape=jax.ShapeDtypeStruct((Bp, 1), jnp.float32),
        grid=grid,
        in_specs=[
            # x: streamed per batch tile; Pallas double-buffers the DMA.
            pl.BlockSpec((tb, Fp), lambda i: (i, 0)),
            # weights/biases: constant index maps -> fetched once, VMEM-resident.
            pl.BlockSpec((Fp, 64), lambda i: (0, 0)),
            pl.BlockSpec((1, 64), lambda i: (0, 0)),
            pl.BlockSpec((64, 32), lambda i: (0, 0)),
            pl.BlockSpec((1, 32), lambda i: (0, 0)),
            pl.BlockSpec((1, 32), lambda i: (0, 0)),
            # b3: SMEM scalar (whole array, untiled).
            pl.BlockSpec(memory_space=pltpu.MemorySpace.SMEM),
        ],
        out_specs=pl.BlockSpec((tb, 1), lambda i: (i, 0)),
        compiler_params=pltpu.CompilerParams(
            # Independent batch tiles: shard across both TCs on v7x.
            dimension_semantics=("parallel",),
            # Budget against v7x (64 MiB physical / 32 MiB scoped); this kernel
            # uses <4 MiB even at block_b=4096, bf16, double-buffered.
            vmem_limit_bytes=32 * 1024 * 1024,
        ),
        cost_estimate=pl.CostEstimate(
            flops=flops, transcendentals=0, bytes_accessed=bytes_accessed),
    )(x_p, w1_p, b1_p, w2_p, b2_p, w3_row, b3_s)

    return out[:B]


def init_params(key, input_size):
    """Deterministic init mirroring the PyTorch module's layer shapes.

    PyTorch stores Linear weights as (out, in); we store the transpose
    (in, out) so the kernel does x @ W directly.
    """
    k1, k2, k3, k4, k5, k6 = jax.random.split(key, 6)

    def uniform(k, shape, fan_in):
        bound = 1.0 / jnp.sqrt(fan_in)
        return jax.random.uniform(k, shape, jnp.float32, -bound, bound)

    w1 = uniform(k1, (input_size, 64), input_size)
    b1 = uniform(k2, (64,), input_size)
    w2 = uniform(k3, (64, 32), 64)
    b2 = uniform(k4, (32,), 64)
    w3 = uniform(k5, (32, 1), 32)
    b3 = uniform(k6, (1,), 32)
    return (w1, b1, w2, b2, w3, b3)


def _reference_forward(x, params):
    """Pure-JAX reference mirroring the kernel's precision path."""
    w1, b1, w2, b2, w3, b3 = params
    xb = x.astype(jnp.bfloat16)
    h1 = jnp.maximum(
        jnp.dot(xb, w1.astype(jnp.bfloat16), preferred_element_type=jnp.float32)
        + b1.reshape(1, -1), 0.0)
    h2 = jnp.maximum(
        jnp.dot(h1.astype(jnp.bfloat16), w2.astype(jnp.bfloat16),
                preferred_element_type=jnp.float32)
        + b2.reshape(1, -1), 0.0)
    return jnp.sum(h2 * w3.reshape(1, -1), axis=-1, keepdims=True) + b3.reshape(1, 1)


if __name__ == "__main__":
    key = jax.random.PRNGKey(0)
    k_params, k_x = jax.random.split(key)

    batch = 8
    input_size = 117  # realistic mushroom one-hot width; exercises the 128-lane pad

    params = init_params(k_params, input_size)
    x = jax.random.normal(k_x, (batch, input_size), jnp.float32)

    out = mushroom_classifier_forward(x, params)
    out = jax.block_until_ready(out)

    ref = _reference_forward(x, params)
    assert out.shape == (batch, 1), out.shape
    assert jnp.allclose(out, ref, atol=2e-3, rtol=2e-3), float(
        jnp.max(jnp.abs(out - ref)))

    print("KERNEL_OK")
</pallas_src>

<mosaic_0001>
module attributes {stable_mosaic.version = 11 : i64} {
  func.func @_mlp_kernel(%arg0: i32, %arg1: memref<16x128xbf16, #tpu.memory_space<vmem>>, %arg2: memref<128x64xbf16, #tpu.memory_space<vmem>>, %arg3: memref<1x64xf32, #tpu.memory_space<vmem>>, %arg4: memref<64x32xbf16, #tpu.memory_space<vmem>>, %arg5: memref<1x32xf32, #tpu.memory_space<vmem>>, %arg6: memref<1x32xf32, #tpu.memory_space<vmem>>, %arg7: memref<1x1xf32, #tpu.memory_space<smem>>, %arg8: memref<16x1xf32, #tpu.memory_space<vmem>>) attributes {dimension_semantics = [#tpu.dimension_semantics<parallel>], iteration_bounds = array<i64: 1>, scalar_prefetch = 0 : i64, scratch_operands = 0 : i64, tpu.core_type = #tpu.core_type<tc>, window_params = [{transform_indices = @transform_0, window_bounds = array<i64: 16, 128>}, {pipeline_mode = #tpu.pipeline_mode<synchronous>, transform_indices = @transform_1, window_bounds = array<i64: 128, 64>}, {pipeline_mode = #tpu.pipeline_mode<synchronous>, transform_indices = @transform_2, window_bounds = array<i64: 1, 64>}, {pipeline_mode = #tpu.pipeline_mode<synchronous>, transform_indices = @transform_3, window_bounds = array<i64: 64, 32>}, {pipeline_mode = #tpu.pipeline_mode<synchronous>, transform_indices = @transform_4, window_bounds = array<i64: 1, 32>}, {pipeline_mode = #tpu.pipeline_mode<synchronous>, transform_indices = @transform_5, window_bounds = array<i64: 1, 32>}, {transform_indices = @transform_6, window_bounds = array<i64: 1, 1>}, {transform_indices = @transform_7, window_bounds = array<i64: 16, 1>}]} {
    %c0 = arith.constant 0 : index
    %c0_0 = arith.constant 0 : index
    %0 = vector.load %arg1[%c0, %c0_0] : memref<16x128xbf16, #tpu.memory_space<vmem>>, vector<16x128xbf16>
    %c0_1 = arith.constant 0 : index
    %c0_2 = arith.constant 0 : index
    %1 = vector.load %arg2[%c0_1, %c0_2] : memref<128x64xbf16, #tpu.memory_space<vmem>>, vector<128x64xbf16>
    %cst = arith.constant dense<0.000000e+00> : vector<16x64xf32>
    %2 = tpu.matmul %0, %1, %cst {dimension_numbers = #tpu.dot_dimension_numbers<[1], [0], [0], [1], [0, 0, 1, 1], [], []>} : vector<16x128xbf16>, vector<128x64xbf16>, vector<16x64xf32> -> vector<16x64xf32>
    %c0_3 = arith.constant 0 : index
    %c0_4 = arith.constant 0 : index
    %3 = vector.load %arg3[%c0_3, %c0_4] : memref<1x64xf32, #tpu.memory_space<vmem>>, vector<1x64xf32>
    %4 = vector.broadcast %3 : vector<1x64xf32> to vector<16x64xf32>
    %5 = arith.addf %2, %4 : vector<16x64xf32>
    %cst_5 = arith.constant 0.000000e+00 : f32
    %6 = vector.broadcast %cst_5 : f32 to vector<16x64xf32>
    %7 = arith.maximumf %5, %6 : vector<16x64xf32>
    %8 = arith.truncf %7 : vector<16x64xf32> to vector<16x64xbf16>
    %c0_6 = arith.constant 0 : index
    %c0_7 = arith.constant 0 : index
    %9 = vector.load %arg4[%c0_6, %c0_7] : memref<64x32xbf16, #tpu.memory_space<vmem>>, vector<64x32xbf16>
    %cst_8 = arith.constant dense<0.000000e+00> : vector<16x32xf32>
    %10 = tpu.matmul %8, %9, %cst_8 {dimension_numbers = #tpu.dot_dimension_numbers<[1], [0], [0], [1], [0, 0, 1, 1], [], []>} : vector<16x64xbf16>, vector<64x32xbf16>, vector<16x32xf32> -> vector<16x32xf32>
    %c0_9 = arith.constant 0 : index
    %c0_10 = arith.constant 0 : index
    %11 = vector.load %arg5[%c0_9, %c0_10] : memref<1x32xf32, #tpu.memory_space<vmem>>, vector<1x32xf32>
    %12 = vector.broadcast %11 : vector<1x32xf32> to vector<16x32xf32>
    %13 = arith.addf %10, %12 : vector<16x32xf32>
    %cst_11 = arith.constant 0.000000e+00 : f32
    %14 = vector.broadcast %cst_11 : f32 to vector<16x32xf32>
    %15 = arith.maximumf %13, %14 : vector<16x32xf32>
    %c0_12 = arith.constant 0 : index
    %c0_13 = arith.constant 0 : index
    %16 = vector.load %arg6[%c0_12, %c0_13] : memref<1x32xf32, #tpu.memory_space<vmem>>, vector<1x32xf32>
    %17 = vector.broadcast %16 : vector<1x32xf32> to vector<16x32xf32>
    %18 = arith.mulf %15, %17 : vector<16x32xf32>
    %cst_14 = arith.constant dense<0.000000e+00> : vector<16xf32>
    %19 = vector.multi_reduction <add>, %18, %cst_14 [1] : vector<16x32xf32> to vector<16xf32>
    %20 = vector.shape_cast %19 : vector<16xf32> to vector<16x1xf32>
    %c0_15 = arith.constant 0 : index
    %c0_16 = arith.constant 0 : index
    %21 = memref.load %arg7[%c0_15, %c0_16] : memref<1x1xf32, #tpu.memory_space<smem>>
    %22 = vector.broadcast %21 : f32 to vector<16x1xf32>
    %23 = arith.addf %20, %22 : vector<16x1xf32>
    %c0_17 = arith.constant 0 : index
    %c0_18 = arith.constant 0 : index
    %24 = vector.load %arg8[%c0_17, %c0_18] : memref<16x1xf32, #tpu.memory_space<vmem>>, vector<16x1xf32>
    tpu.vector_store %arg8[%c0_17, %c0_18], %23 {strides = array<i32>} : memref<16x1xf32, #tpu.memory_space<vmem>>, vector<16x1xf32>,
    return
  }
  func.func @transform_0(%arg0: i32) -> (i32, i32) {
    %c0_i32 = arith.constant 0 : i32
    %c0_i32_0 = arith.constant 0 : i32
    return %arg0, %c0_i32 : i32, i32
  }
  func.func @transform_1(%arg0: i32) -> (i32, i32) {
    %c0_i32 = arith.constant 0 : i32
    %c0_i32_0 = arith.constant 0 : i32
    %c0_i32_1 = arith.constant 0 : i32
    return %c0_i32, %c0_i32_0 : i32, i32
  }
  func.func @transform_2(%arg0: i32) -> (i32, i32) {
    %c0_i32 = arith.constant 0 : i32
    %c0_i32_0 = arith.constant 0 : i32
    %c0_i32_1 = arith.constant 0 : i32
    return %c0_i32, %c0_i32_0 : i32, i32
  }
  func.func @transform_3(%arg0: i32) -> (i32, i32) {
    %c0_i32 = arith.constant 0 : i32
    %c0_i32_0 = arith.constant 0 : i32
    %c0_i32_1 = arith.constant 0 : i32
    return %c0_i32, %c0_i32_0 : i32, i32
  }
  func.func @transform_4(%arg0: i32) -> (i32, i32) {
    %c0_i32 = arith.constant 0 : i32
    %c0_i32_0 = arith.constant 0 : i32
    %c0_i32_1 = arith.constant 0 : i32
    return %c0_i32, %c0_i32_0 : i32, i32
  }
  func.func @transform_5(%arg0: i32) -> (i32, i32) {
    %c0_i32 = arith.constant 0 : i32
    %c0_i32_0 = arith.constant 0 : i32
    %c0_i32_1 = arith.constant 0 : i32
    return %c0_i32, %c0_i32_0 : i32, i32
  }
  func.func @transform_6(%arg0: i32) -> (i32, i32) {
    %c0_i32 = arith.constant 0 : i32
    %c0_i32_0 = arith.constant 0 : i32
    %c0_i32_1 = arith.constant 0 : i32
    return %c0_i32, %c0_i32_0 : i32, i32
  }
  func.func @transform_7(%arg0: i32) -> (i32, i32) {
    %c0_i32 = arith.constant 0 : i32
    %c0_i32_0 = arith.constant 0 : i32
    return %arg0, %c0_i32 : i32, i32
  }
}

</mosaic_0001>

<bundles_post_ra>
// kernel: tpu_custom_call.1
= control target key start
LH: loop header
LB: loop body
LE: loop exit
PB: predicated region body
PF: predicated region fallthrough
CT: control target
= control target key end

     0   :  { %vm157_vm0 = vcmask 523264   ;;  %vm183_vm1 = vcmask 261120   ;;  %vm194_vm2 = vcmask 7168   ;;  %s367_s1 = inlined_call_operand.vmem [shape: bf16[128,64], index: 1, kind: input, shape index: {}]   ;;  %s368_s2 = inlined_call_operand.vmem [shape: f32[1,64], index: 2, kind: input, shape index: {}]   ;;  %s369_s0 = inlined_call_operand.vmem [shape: bf16[16,128], index: 0, kind: input, shape index: {}]   ;;  %s370_s4 = inlined_call_operand.vmem [shape: f32[1,32], index: 4, kind: input, shape index: {}]   ;;  %s371_s3 = inlined_call_operand.vmem [shape: bf16[64,32], index: 3, kind: input, shape index: {}]   ;;  %s372_s5 = inlined_call_operand.vmem [shape: f32[1,32], index: 5, kind: input, shape index: {}]   ;;  %s373_s6 = inlined_call_operand.<no memory space> [shape: f32[1,1], index: 6, kind: input, shape index: {}]   ;;  %s374_s7 = inlined_call_operand.vmem [shape: f32[16,1], index: 7, kind: output, shape index: {}]  }
   0x1   :  { %v262_v0 = vld [vmem:[%s367_s1 + $0x38] sm:$0xff]  ;;  %v261_v1 = vld [vmem:[%s367_s1 + $0x30] sm:$0xff]  ;;  %v260_v2 = vld [vmem:[%s367_s1 + $0x28] sm:$0xff]  ;;  %v191_v33 = vstv %s373_s6 }
   0x2   :  { %104 = vmatpush.bf16.msra.mxu0 %v262_v0  ;;  %v259_v3 = vld [vmem:[%s367_s1 + $0x20] sm:$0xff]  ;;  %v258_v4 = vld [vmem:[%s367_s1 + $0x18] sm:$0xff]  ;;  %v257_v5 = vld [vmem:[%s367_s1 + $0x10] sm:$0xff] }
   0x3   :  { %v256_v6 = vld [vmem:[%s367_s1 + $0x8] sm:$0xff]  ;;  %v255_v7 = vld [vmem:[%s367_s1] sm:$0xff]  ;;  %v266_v9 = vld [vmem:[%s371_s3 + $0x18] sm:$0xff] }
   0x4   :  { %v254_v8 = vld [vmem:[%s369_s0] sm:$0xff]  ;;  %165 = vmatpush.bf16.msra.mxu1 %v266_v9  ;;  %v265_v10 = vld [vmem:[%s371_s3 + $0x10] sm:$0xff]  ;;  %v264_v11 = vld [vmem:[%s371_s3 + $0x8] sm:$0xff] }
   0x5   :  { %v263_v12 = vld [vmem:[%s371_s3] sm:$0xff] }
   0x6   :  { %105 = vmatpush.bf16.msra.mxu0 %v261_v1  ;;  %v267_v14 = vld [vmem:[%s368_s2] ss:$0 sm:$0xff] }
   0x7   :  { %v268_v21 = vld [vmem:[%s370_s4] ss:$0 sm:$0xff] }
   0x8   :  { %166 = vmatpush.bf16.msra.mxu1 %v265_v10  ;;  %v269_v24 = vld [vmem:[%s372_s5] ss:$0 sm:$0xff] }
   0xa   :  { %106 = vmatpush.bf16.msra.mxu0 %v260_v2 }
   0xc   :  { %167 = vmatpush.bf16.msra.mxu1 %v264_v11 }
   0xe   :  { %107 = vmatpush.bf16.msra.mxu0 %v259_v3 }
  0x10   :  { %168 = vmatpush.bf16.msra.mxu1 %v263_v12 }
  0x12   :  { %108 = vmatpush.bf16.msra.mxu0 %v258_v4 }
  0x16   :  { %109 = vmatpush.bf16.msra.mxu0 %v257_v5 }
  0x1a   :  { %110 = vmatpush.bf16.msra.mxu0 %v256_v6 }
  0x1e   :  { %111 = vmatpush.bf16.msra.mxu0 %v255_v7 }
  0x21   :  { %112 = vmatmul.bf16.vlgmr.msra.gmra.mxu0 %v254_v8 }
  0x9e   :  { %v113_v13 = vpop.f32.mrf.mxu0 }
  0x9f   :  { %v114_v15 = vadd.f32 %v267_v14, %v113_v13 }
  0xa1   :  { %v118_v18 = vmax.f32 %v114_v15, 0.0 }
  0xa6   :  { %v115_v16 = vpop.f32.mrf.mxu0 }
  0xa7   :  { %v116_v17 = vadd.f32 %v267_v14, %v115_v16 }
  0xa9   :  { %v119_v19 = vmax.f32 %v116_v17, 0.0 }
  0xab   :  { %v120_v20 = vpack.c.bf16 %v119_v19, %v118_v18 }
  0xad   :  { %253 = vmatmul.msk.bf16.vlgmr.msra.gmra.mxu1 %vm157_vm0, %v120_v20 }
 0x12a   :  { %v170_v22 = vpop.f32.mrf.mxu1 }
 0x12b   :  { %v171_v23 = vadd.f32 %v268_v21, %v170_v22 }
 0x12d   :  { %v175_v25 = vmax.f32 %v171_v23, 0.0 }
 0x12f   :  { %v181_v26 = vmul.f32 %v269_v24, %v175_v25 }
 0x131   :  { %v184_v27 = vsel %vm183_vm1, %v181_v26, 0.0 }
 0x132   :  { %v172_v28 = vpop.f32.mrf.mxu1  ;;  %185 = vadd.xlane.f32.xlu0 %v184_v27 }
 0x133   :  { %v173_v29 = vadd.f32 %v268_v21, %v172_v28 }
 0x135   :  { %v176_v30 = vmax.f32 %v173_v29, 0.0 }
 0x137   :  { %v182_v31 = vmul.f32 %v269_v24, %v176_v30 }
 0x139   :  { %v187_v32 = vsel %vm183_vm1, %v182_v31, 0.0 }
 0x13a   :  { %188 = vadd.xlane.f32.xlu0 %v187_v32 }
 0x1a5   :  { %v186_v34 = vpop.xlane.xlu0 %185 }
 0x1a6   :  { %v192_v35 = vadd.f32 %v191_v33, %v186_v34 }
 0x1a8   :  { %195 = vst.msk [vmem:[%s374_s7] sm:$0xff] %vm194_vm2, %v192_v35 }
 0x1ad   :  { %v189_v36 = vpop.xlane.xlu0 %188 }
 0x1ae   :  { %v193_v37 = vadd.f32 %v191_v33, %v189_v36 }
 0x1b0   :  { %196 = vst.msk [vmem:[%s374_s7 + $0x8] sm:$0xff] %vm194_vm2, %v193_v37 }

</bundles_post_ra>
